<compile_context>
chip_gen: v7x
topology: tpu7x:2x2x1
jax: 0.10.0
libtpu: 0.0.40
codegen_flags: <defaults>
</compile_context>

<pallas_src>
import jax
import jax.numpy as jnp
from jax import lax
from jax.experimental import pallas as pl
from jax.experimental.pallas import tpu as pltpu


def _pixpro_kernel(base_ref, moment_ref, amat_ref, sum_ref, cnt_ref):
    # base_ref / moment_ref : (1, C, N)  native feature dtype
    # amat_ref              : (1, N, N)  native mask dtype (any numeric)
    # sum_ref / cnt_ref     : (1, 1, 1)  f32 per-batch scalar partials
    base = base_ref[0].astype(jnp.float32)      # (C, N)
    moment = moment_ref[0].astype(jnp.float32)  # (C, N)
    mask = (amat_ref[0] != 0).astype(jnp.float32)  # (N, N), values 0/1

    # Pre-normalize each spatial column over the channel axis.
    inv_m = lax.rsqrt(
        jnp.maximum(jnp.sum(moment * moment, axis=0, keepdims=True), 1e-12))
    inv_b = lax.rsqrt(
        jnp.maximum(jnp.sum(base * base, axis=0, keepdims=True), 1e-12))
    m_hat = moment * inv_m                      # (C, N)
    b_hat = base * inv_b                        # (C, N)

    # sum_{i,j} mask[i,j] * <m_hat[:,i], b_hat[:,j]>
    #   = sum_{c,j} (m_hat @ mask)[c,j] * b_hat[c,j]
    t = lax.dot_general(m_hat, mask, (((1,), (0,)), ((), ())),
                        preferred_element_type=jnp.float32)   # (C, N)

    # Reduce fully in-kernel to per-batch scalars (keepdims -> (1, 1)).
    s = jnp.sum(t * b_hat, axis=0, keepdims=True)   # (1, N)
    s = jnp.sum(s, axis=1, keepdims=True)           # (1, 1)
    c = jnp.sum(mask, axis=0, keepdims=True)        # (1, N)
    c = jnp.sum(c, axis=1, keepdims=True)           # (1, 1)

    sum_ref[0] = s
    cnt_ref[0] = c


@jax.jit
def pixpro_loss(base, moment, a_matrix):
    """base, moment: (B, C, H, W); a_matrix: (B, H*W, H*W). Returns scalar f32."""
    assert base.shape == moment.shape, "base, moment shape must be same"
    B, C, H, W = base.shape
    N = H * W

    # Free (trailing-dim collapse) reshapes only -- no pads, no dtype casts.
    base_r = base.reshape(B, C, N)
    moment_r = moment.reshape(B, C, N)
    amat = a_matrix.reshape(B, N, N)

    sums, cnts = pl.pallas_call(
        _pixpro_kernel,
        out_shape=(jax.ShapeDtypeStruct((B, 1, 1), jnp.float32),
                   jax.ShapeDtypeStruct((B, 1, 1), jnp.float32)),
        grid_spec=pltpu.PrefetchScalarGridSpec(
            num_scalar_prefetch=0,
            grid=(B,),
            in_specs=[
                pl.BlockSpec((1, C, N), lambda b: (b, 0, 0)),
                pl.BlockSpec((1, C, N), lambda b: (b, 0, 0)),
                pl.BlockSpec((1, N, N), lambda b: (b, 0, 0)),
            ],
            out_specs=(
                pl.BlockSpec((1, 1, 1), lambda b: (b, 0, 0)),
                pl.BlockSpec((1, 1, 1), lambda b: (b, 0, 0)),
            ),
        ),
        compiler_params=pltpu.CompilerParams(
            dimension_semantics=("parallel",)),
    )(base_r, moment_r, amat)

    # Tiny fused epilogue: sum over B scalars, divide, negate.
    # Same behavior as the reference if the mask is all-zero (NaN); no guard.
    return -(jnp.sum(sums) / jnp.sum(cnts))


def _reference(base, moment, a_matrix):
    B, C, H, W = base.shape
    N = H * W
    b = base.reshape(B, C, N).astype(jnp.float32)
    m = moment.reshape(B, C, N).astype(jnp.float32)
    dot = jnp.einsum("bci,bcj->bij", m, b, precision=lax.Precision.HIGHEST)
    nb = jnp.linalg.norm(b, axis=1)  # (B, N)
    nm = jnp.linalg.norm(m, axis=1)  # (B, N)
    cos = dot / jnp.maximum(nm[:, :, None] * nb[:, None, :], 1e-6)
    mask = a_matrix.reshape(B, N, N) != 0
    return -(jnp.sum(jnp.where(mask, cos, 0.0)) / jnp.sum(mask))


if __name__ == "__main__":
    key = jax.random.PRNGKey(0)
    k1, k2, k3 = jax.random.split(key, 3)

    # Shapes consistent with the module docstring: (B, C, 7, 7), A: (B, 49, 49)
    B, C, H, W = 2, 4, 7, 7
    N = H * W
    base = jax.random.normal(k1, (B, C, H, W), dtype=jnp.float32)
    moment = jax.random.normal(k2, (B, C, H, W), dtype=jnp.float32)
    a_matrix = (jax.random.uniform(k3, (B, N, N)) > 0.5).astype(jnp.float32)

    loss = pixpro_loss(base, moment, a_matrix)
    loss = jax.block_until_ready(loss)

    ref = _reference(base, moment, a_matrix)
    # Kernel matmul runs at default MXU precision (bf16 operand rounding);
    # tolerance is set accordingly.
    assert jnp.allclose(loss, ref, atol=1e-3, rtol=1e-3), (loss, ref)
    print("KERNEL_OK")
</pallas_src>

<mosaic_0001>
module attributes {stable_mosaic.version = 11 : i64} {
  func.func @_pixpro_kernel(%arg0: i32, %arg1: memref<1x4x49xf32, #tpu.memory_space<vmem>>, %arg2: memref<1x4x49xf32, #tpu.memory_space<vmem>>, %arg3: memref<1x49x49xf32, #tpu.memory_space<vmem>>, %arg4: memref<1x1x1xf32, #tpu.memory_space<vmem>>, %arg5: memref<1x1x1xf32, #tpu.memory_space<vmem>>) attributes {dimension_semantics = [#tpu.dimension_semantics<parallel>], iteration_bounds = array<i64: 2>, scalar_prefetch = 0 : i64, scratch_operands = 0 : i64, tpu.core_type = #tpu.core_type<tc>, window_params = [{transform_indices = @transform_0, window_bounds = array<i64: 1, 4, 49>}, {transform_indices = @transform_1, window_bounds = array<i64: 1, 4, 49>}, {transform_indices = @transform_2, window_bounds = array<i64: 1, 49, 49>}, {transform_indices = @transform_3, window_bounds = array<i64: 1, 1, 1>}, {transform_indices = @transform_4, window_bounds = array<i64: 1, 1, 1>}]} {
    %c0 = arith.constant 0 : index
    %c0_0 = arith.constant 0 : index
    %c0_1 = arith.constant 0 : index
    %0 = vector.load %arg1[%c0, %c0_0, %c0_1] : memref<1x4x49xf32, #tpu.memory_space<vmem>>, vector<1x4x49xf32>
    %1 = vector.shape_cast %0 : vector<1x4x49xf32> to vector<4x49xf32>
    %c0_2 = arith.constant 0 : index
    %c0_3 = arith.constant 0 : index
    %c0_4 = arith.constant 0 : index
    %2 = vector.load %arg2[%c0_2, %c0_3, %c0_4] : memref<1x4x49xf32, #tpu.memory_space<vmem>>, vector<1x4x49xf32>
    %3 = vector.shape_cast %2 : vector<1x4x49xf32> to vector<4x49xf32>
    %c0_5 = arith.constant 0 : index
    %c0_6 = arith.constant 0 : index
    %c0_7 = arith.constant 0 : index
    %4 = vector.load %arg3[%c0_5, %c0_6, %c0_7] : memref<1x49x49xf32, #tpu.memory_space<vmem>>, vector<1x49x49xf32>
    %5 = vector.shape_cast %4 : vector<1x49x49xf32> to vector<49x49xf32>
    %cst = arith.constant 0.000000e+00 : f32
    %6 = vector.broadcast %cst : f32 to vector<49x49xf32>
    %7 = arith.cmpf one, %5, %6 : vector<49x49xf32>
    %8 = arith.extui %7 : vector<49x49xi1> to vector<49x49xi32>
    %9 = arith.sitofp %8 : vector<49x49xi32> to vector<49x49xf32>
    %10 = arith.mulf %3, %3 : vector<4x49xf32>
    %cst_8 = arith.constant dense<0.000000e+00> : vector<49xf32>
    %11 = vector.multi_reduction <add>, %10, %cst_8 [0] : vector<4x49xf32> to vector<49xf32>
    %12 = vector.shape_cast %11 : vector<49xf32> to vector<1x49xf32>
    %cst_9 = arith.constant 9.99999996E-13 : f32
    %13 = vector.broadcast %cst_9 : f32 to vector<1x49xf32>
    %14 = arith.maximumf %12, %13 : vector<1x49xf32>
    %15 = math.rsqrt %14 : vector<1x49xf32>
    %16 = arith.mulf %1, %1 : vector<4x49xf32>
    %cst_10 = arith.constant dense<0.000000e+00> : vector<49xf32>
    %17 = vector.multi_reduction <add>, %16, %cst_10 [0] : vector<4x49xf32> to vector<49xf32>
    %18 = vector.shape_cast %17 : vector<49xf32> to vector<1x49xf32>
    %cst_11 = arith.constant 9.99999996E-13 : f32
    %19 = vector.broadcast %cst_11 : f32 to vector<1x49xf32>
    %20 = arith.maximumf %18, %19 : vector<1x49xf32>
    %21 = math.rsqrt %20 : vector<1x49xf32>
    %22 = vector.broadcast %15 : vector<1x49xf32> to vector<4x49xf32>
    %23 = arith.mulf %3, %22 : vector<4x49xf32>
    %24 = vector.broadcast %21 : vector<1x49xf32> to vector<4x49xf32>
    %25 = arith.mulf %1, %24 : vector<4x49xf32>
    %cst_12 = arith.constant dense<0.000000e+00> : vector<4x49xf32>
    %26 = tpu.matmul %23, %9, %cst_12 {dimension_numbers = #tpu.dot_dimension_numbers<[1], [0], [0], [1], [0, 0, 1, 1], [], []>} : vector<4x49xf32>, vector<49x49xf32>, vector<4x49xf32> -> vector<4x49xf32>
    %27 = arith.mulf %26, %25 : vector<4x49xf32>
    %cst_13 = arith.constant dense<0.000000e+00> : vector<49xf32>
    %28 = vector.multi_reduction <add>, %27, %cst_13 [0] : vector<4x49xf32> to vector<49xf32>
    %29 = vector.shape_cast %28 : vector<49xf32> to vector<1x49xf32>
    %cst_14 = arith.constant dense<0.000000e+00> : vector<1xf32>
    %30 = vector.multi_reduction <add>, %29, %cst_14 [1] : vector<1x49xf32> to vector<1xf32>
    %31 = vector.shape_cast %30 : vector<1xf32> to vector<1x1xf32>
    %cst_15 = arith.constant dense<0.000000e+00> : vector<49xf32>
    %32 = vector.multi_reduction <add>, %9, %cst_15 [0] : vector<49x49xf32> to vector<49xf32>
    %33 = vector.shape_cast %32 : vector<49xf32> to vector<1x49xf32>
    %cst_16 = arith.constant dense<0.000000e+00> : vector<1xf32>
    %34 = vector.multi_reduction <add>, %33, %cst_16 [1] : vector<1x49xf32> to vector<1xf32>
    %35 = vector.shape_cast %34 : vector<1xf32> to vector<1x1xf32>
    %c0_17 = arith.constant 0 : index
    %c0_18 = arith.constant 0 : index
    %c0_19 = arith.constant 0 : index
    %36 = vector.load %arg4[%c0_17, %c0_18, %c0_19] : memref<1x1x1xf32, #tpu.memory_space<vmem>>, vector<1x1x1xf32>
    %37 = vector.shape_cast %36 : vector<1x1x1xf32> to vector<1x1xf32>
    %38 = vector.shape_cast %31 : vector<1x1xf32> to vector<1x1x1xf32>
    tpu.vector_store %arg4[%c0_17, %c0_18, %c0_19], %38 {strides = array<i32>} : memref<1x1x1xf32, #tpu.memory_space<vmem>>, vector<1x1x1xf32>,
    %c0_20 = arith.constant 0 : index
    %c0_21 = arith.constant 0 : index
    %c0_22 = arith.constant 0 : index
    %39 = vector.load %arg5[%c0_20, %c0_21, %c0_22] : memref<1x1x1xf32, #tpu.memory_space<vmem>>, vector<1x1x1xf32>
    %40 = vector.shape_cast %39 : vector<1x1x1xf32> to vector<1x1xf32>
    %41 = vector.shape_cast %35 : vector<1x1xf32> to vector<1x1x1xf32>
    tpu.vector_store %arg5[%c0_20, %c0_21, %c0_22], %41 {strides = array<i32>} : memref<1x1x1xf32, #tpu.memory_space<vmem>>, vector<1x1x1xf32>,
    return
  }
  func.func @transform_0(%arg0: i32) -> (i32, i32, i32) {
    %c0_i32 = arith.constant 0 : i32
    %c0_i32_0 = arith.constant 0 : i32
    %c0_i32_1 = arith.constant 0 : i32
    return %arg0, %c0_i32, %c0_i32_0 : i32, i32, i32
  }
  func.func @transform_1(%arg0: i32) -> (i32, i32, i32) {
    %c0_i32 = arith.constant 0 : i32
    %c0_i32_0 = arith.constant 0 : i32
    %c0_i32_1 = arith.constant 0 : i32
    return %arg0, %c0_i32, %c0_i32_0 : i32, i32, i32
  }
  func.func @transform_2(%arg0: i32) -> (i32, i32, i32) {
    %c0_i32 = arith.constant 0 : i32
    %c0_i32_0 = arith.constant 0 : i32
    %c0_i32_1 = arith.constant 0 : i32
    return %arg0, %c0_i32, %c0_i32_0 : i32, i32, i32
  }
  func.func @transform_3(%arg0: i32) -> (i32, i32, i32) {
    %c0_i32 = arith.constant 0 : i32
    %c0_i32_0 = arith.constant 0 : i32
    %c0_i32_1 = arith.constant 0 : i32
    return %arg0, %c0_i32, %c0_i32_0 : i32, i32, i32
  }
  func.func @transform_4(%arg0: i32) -> (i32, i32, i32) {
    %c0_i32 = arith.constant 0 : i32
    %c0_i32_0 = arith.constant 0 : i32
    %c0_i32_1 = arith.constant 0 : i32
    return %arg0, %c0_i32, %c0_i32_0 : i32, i32, i32
  }
}

</mosaic_0001>

<bundles_post_ra>
// kernel: pixpro_loss.1
= control target key start
LH: loop header
LB: loop body
LE: loop exit
PB: predicated region body
PF: predicated region fallthrough
CT: control target
= control target key end

     0   :  { %s614_s15 = smov 0   ;;  %s664_s0 = inlined_call_operand.vmem [shape: f32[2,4,49], index: 0, kind: input, shape index: {}]   ;;  %s665_s1 = inlined_call_operand.vmem [shape: f32[2,4,49], index: 1, kind: input, shape index: {}]   ;;  %s666_s2 = inlined_call_operand.vmem [shape: f32[2,49,49], index: 2, kind: input, shape index: {}]   ;;  %s667_s3 = inlined_call_operand.vmem [shape: f32[2,1,1], index: 3, kind: output, shape index: {0}]   ;;  %s668_s4 = inlined_call_operand.vmem [shape: f32[2,1,1], index: 4, kind: output, shape index: {1}]  }
   0x1 LB: > { %s501_s16 = sadd.s32 4294967295, %s583_s15   ;;  %p505_p0 = scmp.ge.s32.totalorder %s583_s15, 1  ;;  %s583_s15 = sphi %s614_s15, %s15_s15  }
   0x2   : > { %p183_p1 = scmp.lt.s32.totalorder %s583_s15, 3 }
   0x4   : > { %p184_p2 = pnand %p505_p0, %p183_p1 }
   0x5   : > { %p218_p3 = scmp.lt.s32.totalorder (!%p184_p2), %s501_s16, 1  ;;  %v585_v0 = vmov (!%p184_p2), 0.0|0.0   ;;  %vm586_vm0 = vmmov (!%p184_p2), 0   ;;  %v587_v1 = vmov (!%p184_p2), 0.0   ;;  %vm290_vm1 = vcmask (!%p184_p2), 400384  }
   0x6   : > { %187 = sbr.rel (%p184_p2) target bundleno = 425 (0x1a9), region = 32  ;;  %551 = vmatprep.subr.bf16.mxu0 (!%p184_p2), %v585_v0  ;;  %548 = vmatprep.mubr.msk.f32.mxu0 (!%p184_p2), %vm586_vm0, %v587_v1  ;;  %vm268_vm2 = vcmask (!%p184_p2), 396288   ;;  %v588_v13 = vmov (!%p184_p2), 1.0|1.0   ;;  %vm390_vm13 = vcmask (!%p184_p2), 393216   ;;  %vm294_vm14 = vcmask (!%p184_p2), 1040384  }
   0x7   : > { %vm402_vm15 = vcmask (!%p184_p2), 0  }
   0xd   : > { %s670_s16 = smov (!%p218_p3, %s501_s16), 1 }
   0xe   : > { %s560_s17 = smul.u32 56, %s670_s16  ;;  %s506_s18 = sshll.u32 %s670_s16, 2 }
   0xf   : > { %s225_s21 = scalar_lea.vmem %s665_s1, %s506_s18  ;;  %s221_s27 = scalar_lea.vmem %s664_s0, %s506_s18 }
  0x10   : > { %s230_s24 = scalar_lea.vmem %s666_s2, %s560_s17  ;;  %v238_v2 = vld [vmem:[%s225_s21] sm:$0xf]  ;;  %s233_s30 = scalar_lea.vmem %s667_s3, %s670_s16 }
  0x11   : > { %v239_v3 = vld [vmem:[%s230_s24] sm:$0xff]  ;;  %v240_v4 = vld [vmem:[%s230_s24 + $0x8] sm:$0xff]  ;;  %v241_v5 = vld [vmem:[%s230_s24 + $0x10] sm:$0xff]  ;;  %v267_v9 = vmul.f32 %v238_v2, %v238_v2  ;;  %s236_s7 = scalar_lea.vmem %s668_s4, %s670_s16 }
  0x12   : > { %vm246_vm3 = vcmp.ne.f32.partialorder %v239_v3, 0.0  ;;  %vm247_vm4 = vcmp.ne.f32.partialorder %v240_v4, 0.0  ;;  %v242_v6 = vld [vmem:[%s230_s24 + $0x18] sm:$0xff]  ;;  %vm248_vm5 = vcmp.ne.f32.partialorder %v241_v5, 0.0  ;;  %v243_v7 = vld [vmem:[%s230_s24 + $0x20] sm:$0xff]  ;;  %v244_v8 = vld [vmem:[%s230_s24 + $0x28] sm:$0xff] }
  0x13   : > { %v509_v10 = vsel %vm246_vm3, 1.0, %v587_v1  ;;  %v510_v11 = vsel %vm247_vm4, 1.0, %v587_v1  ;;  %vm552_vm6 = vmpackc.low %vm247_vm4, %vm246_vm3  ;;  %vm249_vm7 = vcmp.ne.f32.partialorder %v242_v6, 0.0  ;;  %v511_v12 = vsel %vm248_vm5, 1.0, %v587_v1  ;;  %v245_v19 = vld [vmem:[%s230_s24 + $0x30] sm:$0x1] }
  0x14   : > { %553 = vmatpush3.bf16.msk.msra.mxu0 %vm552_vm6, %v588_v13  ;;  %v379_v14 = vsel %vm290_vm1, %v509_v10, 0.0  ;;  %v380_v15 = vsel %vm290_vm1, %v510_v11, 0.0  ;;  %v512_v16 = vsel %vm249_vm7, 1.0, %v587_v1  ;;  %v382_v17 = vsel %vm290_vm1, %v511_v12, 0.0  ;;  %vm555_vm8 = vmpackc.low %vm249_vm7, %vm248_vm5  ;;  %v237_v42 = vld [vmem:[%s221_s27] sm:$0xf] }
  0x15   : > { %v381_v18 = vadd.f32 %v380_v15, %v379_v14  ;;  %554 = vmatprep.subr.bf16.mxu0 %v585_v0  ;;  %vm250_vm9 = vcmp.ne.f32.partialorder %v243_v7, 0.0  ;;  %vm251_vm10 = vcmp.ne.f32.partialorder %v244_v8, 0.0  ;;  %v384_v20 = vsel %vm290_vm1, %v512_v16, 0.0 }
  0x16   : > { %v513_v21 = vsel %vm250_vm9, 1.0, %v587_v1  ;;  %v514_v22 = vsel %vm251_vm10, 1.0, %v587_v1  ;;  %v269_v23 = vsel %vm268_vm2, %v267_v9, 0.0  ;;  %vm252_vm11 = vcmp.ne.f32.partialorder %v245_v19, 0.0  ;;  %vm558_vm12 = vmpackc.low %vm251_vm10, %vm250_vm9 }
  0x17   : > { %v383_v24 = vadd.f32 %v382_v17, %v381_v18  ;;  %v386_v25 = vsel %vm290_vm1, %v513_v21, 0.0  ;;  %v270_v26 = vrot.slane %v269_v23, 4  ;;  %v388_v28 = vsel %vm290_vm1, %v514_v22, 0.0 }
  0x18   : > { %556 = vmatpush3.bf16.msk.msra.mxu0 %vm555_vm8, %v588_v13  ;;  %v515_v31 = vsel %vm252_vm11, 1.0, %v587_v1  ;;  %v278_v43 = vmul.f32 %v237_v42, %v237_v42 }
  0x19   : > { %v385_v27 = vadd.f32 %v384_v20, %v383_v24  ;;  %557 = vmatprep.subr.bf16.mxu0 %v585_v0  ;;  %v271_v29 = vadd.f32 %v270_v26, %v269_v23  ;;  %v391_v32 = vsel %vm390_vm13, %v515_v31, 0.0 }
  0x1a   : > { %v279_v44 = vsel %vm268_vm2, %v278_v43, 0.0 }
  0x1b   : > { %v387_v30 = vadd.f32 %v386_v25, %v385_v27  ;;  %v272_v33 = vrot.slane %v271_v29, 2  ;;  %v280_v45 = vrot.slane %v279_v44, 4 }
  0x1c   : > { %559 = vmatpush3.bf16.msk.msra.mxu0 %vm558_vm12, %v588_v13 }
  0x1d   : > { %546 = vmatprep.subr.mxu0 %v587_v1  ;;  %v389_v34 = vadd.f32 %v388_v28, %v387_v30  ;;  %v273_v35 = vadd.f32 %v272_v33, %v271_v29  ;;  %v281_v46 = vadd.f32 %v280_v45, %v279_v44 }
  0x1f   : > { %v392_v36 = vadd.f32 %v391_v32, %v389_v34  ;;  %v274_v37 = vrot.slane %v273_v35, 1  ;;  %v282_v47 = vrot.slane %v281_v46, 2 }
  0x20   : > { %547 = vmatpush3.msk.msra.mxu0 %vm294_vm14, %v515_v31 }
  0x21   : > { %v275_v38 = vadd.f32 %v274_v37, %v273_v35  ;;  %v283_v48 = vadd.f32 %v282_v47, %v281_v46  ;;  %v393_v53 = vrot.slane %v392_v36, 4 }
  0x23   : > { %v276_v39 = vmax.f32 %v275_v38, 1e-12  ;;  %v284_v49 = vrot.slane %v283_v48, 1  ;;  %v394_v55 = vadd.f32 %v393_v53, %v392_v36 }
  0x25   : > { %573 = vrsqrt.f32 %v276_v39  ;;  %v285_v50 = vadd.f32 %v284_v49, %v283_v48  ;;  %v395_v59 = vrot.slane %v394_v55, 2 }
  0x27   : > { %v286_v51 = vmax.f32 %v285_v50, 1e-12  ;;  %v396_v63 = vadd.f32 %v395_v59, %v394_v55 }
  0x29   : > { %575 = vrsqrt.f32 %v286_v51 }
  0x2f   : > { %v574_v40 = vpop.eup %573 }
  0x30   : > { %v288_v41 = vmul.f32 %v574_v40, %v238_v2  ;;  %v397_v2 = vrot.slane %v396_v63, 1 }
  0x32   : > { %549 = vmatmul.mubr.msk.f32.vlgmr.msra.gmra.mrb[0].mxu0 %vm290_vm1, %v288_v41  ;;  %v398_v5 = vadd.f32 %v397_v2, %v396_v63 }
  0x33   : > { %v576_v52 = vpop.eup %575 }
  0x34   : > { %v289_v54 = vmul.f32 %v576_v52, %v237_v42  ;;  %v399_v7 = vsel %vm290_vm1, %v398_v5, 0.0 }
 0x105   : > { %v364_v56 = vpop.f32.mrb[0].mxu0 }
 0x106   : > { %v368_v57 = vmul.f32 %v364_v56, %v289_v54  ;;  %v550_v58 = vpop.f32.mrb[1].mxu0 }
 0x108   : > { %v369_v60 = vsel %vm268_vm2, %v368_v57, 0.0 }
 0x109   : > { %v370_v61 = vrot.slane %v369_v60, 4 }
 0x10b   : > { %v371_v62 = vadd.f32 %v370_v61, %v369_v60 }
 0x10d   : > { %v372_v0 = vrot.slane %v371_v62, 2 }
 0x10f   : > { %v373_v1 = vadd.f32 %v372_v0, %v371_v62 }
 0x111   : > { %v374_v3 = vrot.slane %v373_v1, 1 }
 0x113   : > { %v375_v4 = vadd.f32 %v374_v3, %v373_v1 }
 0x115   : > { %v376_v6 = vsel %vm290_vm1, %v375_v4, 0.0 }
 0x116   : > { %377 = vadd.xlane.f32.xlu0 %v376_v6 }
 0x11a   : > { %400 = vadd.xlane.f32.xlu0 %v399_v7 }
 0x1a3   : > { %v378_v8 = vpop.xlane.xlu0 %377 }
 0x1a4   : > { %403 = vst.msk [vmem:[%s233_s30] sm:$0x1] %vm402_vm15, %v378_v8 }
 0x1a7   : > { %v401_v9 = vpop.xlane.xlu0 %400 }
 0x1a8   : > { %404 = vst.msk [vmem:[%s236_s7] sm:$0x1] %vm402_vm15, %v401_v9 }
 0x1a9 PF: > { %s15_s15 = sadd.s32 1, %s583_s15  }
 0x1aa   : > { %p12_p4 = scmp.ge.s32.totalorder %s15_s15, 4  }
 0x1ac   :  { %14 = sbr.rel (!%p12_p4) target bundleno = 1 (0x1), region = 80 }

</bundles_post_ra>
